<compile_context>
chip_gen: v7x
topology: tpu7x:2x2x1
jax: 0.10.0
libtpu: 0.0.40
codegen_flags: <defaults>
</compile_context>

<pallas_src>
import jax
import jax.numpy as jnp
from jax.experimental import pallas as pl
from jax.experimental.pallas import tpu as pltpu


# ---------------------------------------------------------------------------
# Kernels
# ---------------------------------------------------------------------------
def _ffn_kernel_resident(x_ref, w1_ref, b1_ref, w2_ref, b2_ref, o_ref):
    """Whole W1/W2 resident in VMEM; grid = (token tiles,)."""
    w_dtype = w1_ref.dtype
    x = x_ref[...].astype(w_dtype)                       # in-kernel activation cast
    h = jnp.dot(x, w1_ref[...], preferred_element_type=jnp.float32)
    h = jnp.maximum(h + b1_ref[...], 0.0)                # b1 is f32
    # dropout == identity (eval mode).
    # TODO(synk): training-mode dropout (pltpu.prng_*) not implemented.
    o = jnp.dot(h.astype(w_dtype), w2_ref[...], preferred_element_type=jnp.float32)
    o_ref[...] = (o + b2_ref[...]).astype(o_ref.dtype)   # b2 is f32


def _ffn_kernel_split(x_ref, w1_ref, b1_ref, w2_ref, b2_ref, o_ref, acc_ref):
    """d_ff split across grid axis 1 ("arbitrary"); f32 VMEM accumulator."""
    f = pl.program_id(1)
    w_dtype = w1_ref.dtype

    @pl.when(f == 0)
    def _():
        # Fold the output bias into the accumulator init.
        acc_ref[...] = jnp.broadcast_to(b2_ref[...], acc_ref.shape)

    x = x_ref[...].astype(w_dtype)
    h = jnp.dot(x, w1_ref[...], preferred_element_type=jnp.float32)
    h = jnp.maximum(h + b1_ref[...], 0.0)
    # dropout == identity (eval mode).
    acc_ref[...] += jnp.dot(h.astype(w_dtype), w2_ref[...],
                            preferred_element_type=jnp.float32)

    @pl.when(f == pl.num_programs(1) - 1)
    def _():
        o_ref[...] = acc_ref[...].astype(o_ref.dtype)


# ---------------------------------------------------------------------------
# Wrapper
# ---------------------------------------------------------------------------
def _pick_tm(n_tok, tm_req):
    """Token-row tile: prefer a divisor of n_tok (no pad/slice HBM passes)."""
    tm_req = max(8, (tm_req // 8) * 8)
    if n_tok <= tm_req:
        return ((n_tok + 7) // 8) * 8          # single tile covering all tokens
    for cand in range(tm_req, max(tm_req // 2 - 1, 7), -8):
        if n_tok % cand == 0:
            return cand
    return tm_req                              # fall back to padding


def _vmem_capacity_bytes():
    try:
        return int(pltpu.get_tpu_info().vmem_capacity_bytes)
    except Exception:
        return 64 * 2**20                      # conservative (v7x-sized) fallback


def positionwise_feed_forward(x, w1, b1, w2, b2, *, tm=512, compute_dtype=None):
    """x: (B, S, d_model); w1: (d_model, d_ff); b1: (d_ff,);
       w2: (d_ff, d_model); b2: (d_model,)."""
    B, S, d_model = x.shape
    d_ff = w1.shape[1]
    out_dtype = x.dtype

    # Biases stay f32 regardless of compute dtype (tiny; avoids per-step casts).
    b1_2 = b1.astype(jnp.float32).reshape(1, d_ff)
    b2_2 = b2.astype(jnp.float32).reshape(1, d_model)

    # Pre-cast ONLY the weights (they may be re-read per token tile); activations
    # are cast per-tile inside the kernel to avoid an extra HBM pass over x.
    if compute_dtype is not None:
        w1 = w1.astype(compute_dtype)
        w2 = w2.astype(compute_dtype)

    n_tok = B * S
    tm = _pick_tm(n_tok, tm)
    n_tok_pad = pl.cdiv(n_tok, tm) * tm

    x2 = x.reshape(n_tok, d_model)
    if n_tok_pad != n_tok:
        x2 = jnp.pad(x2, ((0, n_tok_pad - n_tok), (0, 0)))

    vmem_cap = _vmem_capacity_bytes()
    budget = int(vmem_cap * 0.80)              # leave headroom for compiler scratch

    x_it = jnp.dtype(x2.dtype).itemsize
    w_it = jnp.dtype(w1.dtype).itemsize
    o_it = jnp.dtype(out_dtype).itemsize

    def _resident_bytes():
        return (2 * tm * d_model * x_it                      # x tiles (double-buffered)
                + 2 * d_model * d_ff * w_it                  # W1
                + 2 * d_ff * d_model * w_it                  # W2
                + 2 * tm * d_model * o_it                    # out tiles
                + 2 * max(d_ff, 128) * 4 + 2 * max(d_model, 128) * 4   # biases
                + 2 * tm * d_ff * 4)                         # in-kernel intermediate h

    def _split_bytes(tf):
        return (2 * tm * d_model * x_it
                + 2 * d_model * tf * w_it
                + 2 * tf * d_model * w_it
                + 2 * tm * d_model * o_it
                + 2 * max(tf, 128) * 4 + 2 * max(d_model, 128) * 4
                + tm * d_model * 4                           # f32 accumulator scratch
                + 2 * tm * tf * 4)                           # in-kernel intermediate h

    if _resident_bytes() <= budget:
        # ------------------------------------------------------------------
        # Weight-resident path: weights DMA'd once per kernel, no reduction axis.
        # ------------------------------------------------------------------
        vmem_limit = int(min(max(int(_resident_bytes() * 1.25), 32 * 2**20),
                             int(vmem_cap * 0.90)))
        out = pl.pallas_call(
            _ffn_kernel_resident,
            out_shape=jax.ShapeDtypeStruct((n_tok_pad, d_model), out_dtype),
            grid_spec=pltpu.PrefetchScalarGridSpec(
                num_scalar_prefetch=0,
                grid=(n_tok_pad // tm,),
                in_specs=[
                    pl.BlockSpec((tm, d_model), lambda i: (i, 0)),       # x row tile
                    pl.BlockSpec((d_model, d_ff), lambda i: (0, 0)),     # full W1
                    pl.BlockSpec((1, d_ff), lambda i: (0, 0)),           # b1 (f32)
                    pl.BlockSpec((d_ff, d_model), lambda i: (0, 0)),     # full W2
                    pl.BlockSpec((1, d_model), lambda i: (0, 0)),        # b2 (f32)
                ],
                out_specs=pl.BlockSpec((tm, d_model), lambda i: (i, 0)),
            ),
            compiler_params=pltpu.CompilerParams(
                dimension_semantics=("parallel",),
                vmem_limit_bytes=vmem_limit),
        )(x2, w1, b1_2, w2, b2_2)
    else:
        # ------------------------------------------------------------------
        # d_ff-reduction path (e.g. large models on v7x's 64 MiB VMEM).
        # ------------------------------------------------------------------
        d_ff_pad = pl.cdiv(d_ff, 128) * 128
        if d_ff_pad != d_ff:
            # Zero-padded hidden units contribute exactly zero (relu(0+0)=0).
            w1 = jnp.pad(w1, ((0, 0), (0, d_ff_pad - d_ff)))
            w2 = jnp.pad(w2, ((0, d_ff_pad - d_ff), (0, 0)))
            b1_2 = jnp.pad(b1_2, ((0, 0), (0, d_ff_pad - d_ff)))

        # Largest 128-multiple divisor of d_ff_pad that fits the VMEM budget.
        tf = 128
        c = d_ff_pad
        while c >= 128:
            if d_ff_pad % c == 0 and _split_bytes(c) <= budget:
                tf = c
                break
            c -= 128

        vmem_limit = int(min(max(int(_split_bytes(tf) * 1.25), 32 * 2**20),
                             int(vmem_cap * 0.90)))
        out = pl.pallas_call(
            _ffn_kernel_split,
            out_shape=jax.ShapeDtypeStruct((n_tok_pad, d_model), out_dtype),
            grid_spec=pltpu.PrefetchScalarGridSpec(
                num_scalar_prefetch=0,
                grid=(n_tok_pad // tm, d_ff_pad // tf),
                in_specs=[
                    pl.BlockSpec((tm, d_model), lambda i, f: (i, 0)),    # x row tile
                    pl.BlockSpec((d_model, tf), lambda i, f: (0, f)),    # W1 col slice
                    pl.BlockSpec((1, tf), lambda i, f: (0, f)),          # b1 slice (f32)
                    pl.BlockSpec((tf, d_model), lambda i, f: (f, 0)),    # W2 row slice
                    pl.BlockSpec((1, d_model), lambda i, f: (0, 0)),     # b2 (f32)
                ],
                out_specs=pl.BlockSpec((tm, d_model), lambda i, f: (i, 0)),
                scratch_shapes=[pltpu.VMEM((tm, d_model), jnp.float32)],
            ),
            compiler_params=pltpu.CompilerParams(
                dimension_semantics=("parallel", "arbitrary"),
                vmem_limit_bytes=vmem_limit),
        )(x2, w1, b1_2, w2, b2_2)

    if n_tok_pad != n_tok:
        out = out[:n_tok]
    return out.reshape(B, S, d_model)


# ---------------------------------------------------------------------------
# Self-test
# ---------------------------------------------------------------------------
if __name__ == "__main__":
    # Small shapes consistent with the module's forward: (batch, seq, d_model)
    B, S, d_model, d_ff = 2, 8, 32, 64

    key = jax.random.PRNGKey(0)
    kx, kw1, kb1, kw2, kb2 = jax.random.split(key, 5)

    x = jax.random.normal(kx, (B, S, d_model), dtype=jnp.float32)
    # Deterministic parameter init (nn.Linear-like scale), stored transposed.
    w1 = jax.random.normal(kw1, (d_model, d_ff), dtype=jnp.float32) / jnp.sqrt(d_model)
    b1 = jax.random.normal(kb1, (d_ff,), dtype=jnp.float32) * 0.01
    w2 = jax.random.normal(kw2, (d_ff, d_model), dtype=jnp.float32) / jnp.sqrt(d_ff)
    b2 = jax.random.normal(kb2, (d_model,), dtype=jnp.float32) * 0.01

    ref = jnp.maximum(x @ w1 + b1, 0.0) @ w2 + b2

    # f32 path (tight check).
    y = positionwise_feed_forward(x, w1, b1, w2, b2)
    y = jax.block_until_ready(y)
    assert jnp.allclose(y, ref, atol=1e-4, rtol=1e-4), "f32 mismatch vs reference"

    # bf16 compute path (weights pre-cast, x cast in-kernel) -- loose check.
    y_bf = positionwise_feed_forward(x, w1, b1, w2, b2, compute_dtype=jnp.bfloat16)
    y_bf = jax.block_until_ready(y_bf)
    assert jnp.allclose(y_bf, ref, atol=1.5e-1, rtol=1e-1), "bf16 mismatch vs reference"

    print("KERNEL_OK")
</pallas_src>

<mosaic_0001>
module attributes {stable_mosaic.version = 11 : i64} {
  func.func @_ffn_kernel_resident(%arg0: i32, %arg1: memref<16x32xf32, #tpu.memory_space<vmem>>, %arg2: memref<32x64xf32, #tpu.memory_space<vmem>>, %arg3: memref<1x64xf32, #tpu.memory_space<vmem>>, %arg4: memref<64x32xf32, #tpu.memory_space<vmem>>, %arg5: memref<1x32xf32, #tpu.memory_space<vmem>>, %arg6: memref<16x32xf32, #tpu.memory_space<vmem>>) attributes {dimension_semantics = [#tpu.dimension_semantics<parallel>], iteration_bounds = array<i64: 1>, scalar_prefetch = 0 : i64, scratch_operands = 0 : i64, tpu.core_type = #tpu.core_type<tc>, window_params = [{transform_indices = @transform_0, window_bounds = array<i64: 16, 32>}, {pipeline_mode = #tpu.pipeline_mode<synchronous>, transform_indices = @transform_1, window_bounds = array<i64: 32, 64>}, {pipeline_mode = #tpu.pipeline_mode<synchronous>, transform_indices = @transform_2, window_bounds = array<i64: 1, 64>}, {pipeline_mode = #tpu.pipeline_mode<synchronous>, transform_indices = @transform_3, window_bounds = array<i64: 64, 32>}, {pipeline_mode = #tpu.pipeline_mode<synchronous>, transform_indices = @transform_4, window_bounds = array<i64: 1, 32>}, {transform_indices = @transform_5, window_bounds = array<i64: 16, 32>}]} {
    %c0 = arith.constant 0 : index
    %c0_0 = arith.constant 0 : index
    %0 = vector.load %arg1[%c0, %c0_0] : memref<16x32xf32, #tpu.memory_space<vmem>>, vector<16x32xf32>
    %c0_1 = arith.constant 0 : index
    %c0_2 = arith.constant 0 : index
    %1 = vector.load %arg2[%c0_1, %c0_2] : memref<32x64xf32, #tpu.memory_space<vmem>>, vector<32x64xf32>
    %cst = arith.constant dense<0.000000e+00> : vector<16x64xf32>
    %2 = tpu.matmul %0, %1, %cst {dimension_numbers = #tpu.dot_dimension_numbers<[1], [0], [0], [1], [0, 0, 1, 1], [], []>} : vector<16x32xf32>, vector<32x64xf32>, vector<16x64xf32> -> vector<16x64xf32>
    %c0_3 = arith.constant 0 : index
    %c0_4 = arith.constant 0 : index
    %3 = vector.load %arg3[%c0_3, %c0_4] : memref<1x64xf32, #tpu.memory_space<vmem>>, vector<1x64xf32>
    %4 = vector.broadcast %3 : vector<1x64xf32> to vector<16x64xf32>
    %5 = arith.addf %2, %4 : vector<16x64xf32>
    %cst_5 = arith.constant 0.000000e+00 : f32
    %6 = vector.broadcast %cst_5 : f32 to vector<16x64xf32>
    %7 = arith.maximumf %5, %6 : vector<16x64xf32>
    %c0_6 = arith.constant 0 : index
    %c0_7 = arith.constant 0 : index
    %8 = vector.load %arg4[%c0_6, %c0_7] : memref<64x32xf32, #tpu.memory_space<vmem>>, vector<64x32xf32>
    %cst_8 = arith.constant dense<0.000000e+00> : vector<16x32xf32>
    %9 = tpu.matmul %7, %8, %cst_8 {dimension_numbers = #tpu.dot_dimension_numbers<[1], [0], [0], [1], [0, 0, 1, 1], [], []>} : vector<16x64xf32>, vector<64x32xf32>, vector<16x32xf32> -> vector<16x32xf32>
    %c0_9 = arith.constant 0 : index
    %c0_10 = arith.constant 0 : index
    %10 = vector.load %arg5[%c0_9, %c0_10] : memref<1x32xf32, #tpu.memory_space<vmem>>, vector<1x32xf32>
    %11 = vector.broadcast %10 : vector<1x32xf32> to vector<16x32xf32>
    %12 = arith.addf %9, %11 : vector<16x32xf32>
    %c0_11 = arith.constant 0 : index
    %c0_12 = arith.constant 0 : index
    %13 = vector.load %arg6[%c0_11, %c0_12] : memref<16x32xf32, #tpu.memory_space<vmem>>, vector<16x32xf32>
    tpu.vector_store %arg6[%c0_11, %c0_12], %12 {strides = array<i32>} : memref<16x32xf32, #tpu.memory_space<vmem>>, vector<16x32xf32>,
    return
  }
  func.func @transform_0(%arg0: i32) -> (i32, i32) {
    %c0_i32 = arith.constant 0 : i32
    %c0_i32_0 = arith.constant 0 : i32
    return %arg0, %c0_i32 : i32, i32
  }
  func.func @transform_1(%arg0: i32) -> (i32, i32) {
    %c0_i32 = arith.constant 0 : i32
    %c0_i32_0 = arith.constant 0 : i32
    %c0_i32_1 = arith.constant 0 : i32
    return %c0_i32, %c0_i32_0 : i32, i32
  }
  func.func @transform_2(%arg0: i32) -> (i32, i32) {
    %c0_i32 = arith.constant 0 : i32
    %c0_i32_0 = arith.constant 0 : i32
    %c0_i32_1 = arith.constant 0 : i32
    return %c0_i32, %c0_i32_0 : i32, i32
  }
  func.func @transform_3(%arg0: i32) -> (i32, i32) {
    %c0_i32 = arith.constant 0 : i32
    %c0_i32_0 = arith.constant 0 : i32
    %c0_i32_1 = arith.constant 0 : i32
    return %c0_i32, %c0_i32_0 : i32, i32
  }
  func.func @transform_4(%arg0: i32) -> (i32, i32) {
    %c0_i32 = arith.constant 0 : i32
    %c0_i32_0 = arith.constant 0 : i32
    %c0_i32_1 = arith.constant 0 : i32
    return %c0_i32, %c0_i32_0 : i32, i32
  }
  func.func @transform_5(%arg0: i32) -> (i32, i32) {
    %c0_i32 = arith.constant 0 : i32
    %c0_i32_0 = arith.constant 0 : i32
    return %arg0, %c0_i32 : i32, i32
  }
}

</mosaic_0001>

<bundles_post_ra>
// kernel: tpu_custom_call.1
= control target key start
LH: loop header
LB: loop body
LE: loop exit
PB: predicated region body
PF: predicated region fallthrough
CT: control target
= control target key end

     0   :  { %vm34_vm0 = vcmask 261120   ;;  %s433_s0 = inlined_call_operand.vmem [shape: f32[16,32], index: 0, kind: input, shape index: {}]   ;;  %s434_s1 = inlined_call_operand.vmem [shape: f32[32,64], index: 1, kind: input, shape index: {}]   ;;  %s435_s2 = inlined_call_operand.vmem [shape: f32[1,64], index: 2, kind: input, shape index: {}]   ;;  %s436_s3 = inlined_call_operand.vmem [shape: f32[64,32], index: 3, kind: input, shape index: {}]   ;;  %s437_s4 = inlined_call_operand.vmem [shape: f32[1,32], index: 4, kind: input, shape index: {}]   ;;  %s438_s5 = inlined_call_operand.hbm [shape: f32[16,32], index: 5, kind: output, shape index: {}]  }
   0x1   :  { %v23_v0 = vld [vmem:[%s434_s1] sm:$0xff]  ;;  %v24_v1 = vld [vmem:[%s434_s1 + $0x8] sm:$0xff]  ;;  %v25_v2 = vld [vmem:[%s434_s1 + $0x10] sm:$0xff] }
   0x2   :  { %v285_v3 = vpack.c.bf16 %v24_v1, %v23_v0  ;;  %v26_v4 = vld [vmem:[%s434_s1 + $0x18] sm:$0xff]  ;;  %v21_v5 = vld [vmem:[%s433_s0] sm:$0xff]  ;;  %v119_v8 = vld [vmem:[%s436_s3 + $0x8] sm:$0xff] }
   0x3   :  { %v289_v6 = vpack.c.bf16 %v26_v4, %v25_v2  ;;  %263 = vmatprep.mubr.msk.f32.mxu0 %vm34_vm0, %v21_v5  ;;  %v118_v7 = vld [vmem:[%s436_s3] sm:$0xff]  ;;  %v120_v9 = vld [vmem:[%s436_s3 + $0x10] sm:$0xff]  ;;  %v121_v11 = vld [vmem:[%s436_s3 + $0x18] sm:$0xff] }
   0x4   :  { %286 = vmatprep.subr.bf16.mxu0 %v285_v3  ;;  %v293_v10 = vpack.c.bf16 %v119_v8, %v118_v7  ;;  %v297_v12 = vpack.c.bf16 %v121_v11, %v120_v9  ;;  %v122_v13 = vld [vmem:[%s436_s3 + $0x20] sm:$0xff]  ;;  %v123_v14 = vld [vmem:[%s436_s3 + $0x28] sm:$0xff] }
   0x5   :  { %288 = vmatpush3.bf16.msra.mxu0 %v285_v3 }
   0x6   :  { %10 = vsyncpa [#allocation3], 0  ;;  %290 = vmatprep.subr.bf16.mxu0 %v289_v6  ;;  %294 = vmatprep.subr.bf16.mxu1 %v293_v10  ;;  %v301_v15 = vpack.c.bf16 %v123_v14, %v122_v13  ;;  %v22_v16 = vld [vmem:[%s433_s0 + $0x8] sm:$0xff]  ;;  %v124_v17 = vld [vmem:[%s436_s3 + $0x30] sm:$0xff]  ;;  %vm133_vm1 = vcmask 523264  }
   0x7   :  { %296 = vmatpush3.bf16.msra.mxu1 %v293_v10  ;;  %v125_v18 = vld [vmem:[%s436_s3 + $0x38] sm:$0xff]  ;;  %v233_v20 = vld [vmem:[%s435_s2] ss:$0 sm:$0xff]  ;;  %s336_s3 = smov [#allocation2]  }
   0x8   :  { %298 = vmatprep.subr.bf16.mxu1 %v297_v12  ;;  %v305_v19 = vpack.c.bf16 %v125_v18, %v124_v17  ;;  %v236_v27 = vld [vmem:[%s437_s4] ss:$0 sm:$0xff]  ;;  %s222_s23 = sshll.u32 %s336_s3, 4  ;;  %s223_s23 = int_to_ptr.vmem [resolvable:$true] %s222_s23 }
   0x9   :  { %292 = vmatpush3.bf16.msra.mxu0 %v289_v6  ;;  %s312_s2 = scalar_lea.vmem %s223_s23, 256  ;;  %p317_p1 = scmp.lt.s32.totalorder %s223_s23, %s223_s23 }
   0xa   :  { %p313_p0 = scmp.ne.s32.totalorder %s223_s23, %s312_s2  ;;  %p318_p2 = scmp.lt.s32.totalorder %s312_s2, %s312_s2 }
   0xb   :  { %300 = vmatpush3.bf16.msra.mxu1 %v297_v12 }
   0xc   :  { %264 = vmatmul.mubr.msk.f32.vlgmr.msra.gmra.mrb[0].mxu0 %vm34_vm0, %v22_v16  ;;  %302 = vmatprep.subr.bf16.mxu1 %v301_v15  ;;  %p319_p3 = por %p318_p2, %p317_p1 }
   0xe   :  { %p320_p4 = pnand %p319_p3, %p313_p0 }
   0xf   :  { %304 = vmatpush3.bf16.msra.mxu1 %v301_v15 }
  0x10   :  { %306 = vmatprep.subr.bf16.mxu1 %v305_v19 }
  0x13   :  { %308 = vmatpush3.bf16.msra.mxu1 %v305_v19 }
  0xdf   :  { %v265_v21 = vpop.f32.mrb[0].mxu0 }
  0xe0   :  { %v113_v22 = vadd.f32 %v265_v21, %v233_v20  ;;  %v107_v23 = vpop.f32.mrb[1].mxu0 }
  0xe1   :  { %v108_v24 = vadd.f32 %v233_v20, %v107_v23 }
  0xe2   :  { %v117_v26 = vmax.f32 %v113_v22, 0.0 }
  0xe3   :  { %v116_v25 = vmax.f32 %v108_v24, 0.0 }
  0xe5   :  { %282 = vmatprep.mubr.msk.f32.mxu1 %vm133_vm1, %v116_v25 }
  0xe6   :  { %283 = vmatmul.mubr.msk.f32.vlgmr.msra.gmra.mrb[0].mxu1 %vm133_vm1, %v117_v26 }
 0x1b9   :  { %v284_v28 = vpop.f32.mrb[0].mxu1 }
 0x1ba   :  { %v212_v29 = vadd.f32 %v284_v28, %v236_v27  ;;  %v206_v30 = vpop.f32.mrb[1].mxu1 }
 0x1bb   :  { %v207_v31 = vadd.f32 %v236_v27, %v206_v30 }
 0x1bc   :  { %216 = vst.msk [vmem:[#allocation2 + $0x8] sm:$0xff] %vm34_vm0, %v212_v29 }
 0x1bd   :  { %215 = vst.msk [vmem:[#allocation2] sm:$0xff] %vm34_vm0, %v207_v31 }
 0x1be   :  { %323 = shalt.err (!%p320_p4)
}
 0x1bf   :  { %s324_s25 = scalar_lea.hbm %s438_s5, 256 }
 0x1c0   :  { %p325_p5 = scmp.ne.s32.totalorder %s438_s5, %s324_s25  ;;  %p328_p6 = scmp.lt.u32.totalorder %s324_s25, %s438_s5 }
 0x1c2   :  { %p330_p7 = pnand %p328_p6, %p325_p5 }
 0x1c4   :  { %333 = shalt.err (!%p330_p7)
}
 0x1c5   :  { %s337_s30 = smov 128   ;;  %s338_s6 = smov 8  }
 0x1c6   :  { %228 = dma.vmem_to_hbm [thread:$0]  %s223_s23, 256, %s438_s5, [#allocation3], %s337_s30, %s337_s30, %s338_s6  }
 0x1c7   :  { %334 = dma.done.wait [#allocation3], 256  }
 0x1c8   :  { %335 = vsyncadd [#allocation3], 4294967040 }
 0x1c9   :  { %232 = vsyncpa [#allocation3], 1 }

</bundles_post_ra>
